<compile_context>
chip_gen: v6e
topology: v6e:2x2x1
jax: 0.10.0
libtpu: 0.0.40
codegen_flags: <defaults>
</compile_context>

<pallas_src>
import jax
import jax.numpy as jnp
from jax.experimental import pallas as pl
from jax.experimental.pallas import tpu as pltpu

LANE = 128


def _fused_sage_kernel(a1_ref, a2_ref, x_ref, w1_ref, b1_ref, w2_ref, b2_ref, o_ref):
    """Fused 2-layer GraphSAGE('mean') forward, entirely in VMEM (single invocation, no grid).

    a1_ref : (n_dst1, n_src1)  bf16  row-normalized adjacency of mfgs[0]
    a2_ref : (n_dst2, n_dst1)  bf16  row-normalized adjacency of mfgs[1]
    x_ref  : (n_src1, F)       bf16  input features, lane-padded to F = 128
    w1_ref : (2F, H)           bf16  stacked [W_neigh1^T ; W_self1^T], lane-padded H = 128
    b1_ref : (1, H)            f32   bias1 (lane-padded)
    w2_ref : (2H, C)           bf16  stacked [W_neigh2^T ; W_self2^T], lane-padded C = 128
    b2_ref : (1, C)            f32   bias2 (lane-padded)
    o_ref  : (n_dst2, C)       f32   output (padded lanes sliced off by the wrapper)
    """
    n_dst1 = a1_ref.shape[0]
    n_dst2 = a2_ref.shape[0]
    x = x_ref[...]
    cdt = x.dtype  # bf16 MXU operand dtype

    # ---- layer 1: mean aggregation, then one fused [neigh | self] MXU pass, bias + ReLU (f32 VPU)
    agg1 = jnp.dot(a1_ref[...], x, preferred_element_type=jnp.float32)
    z1 = jnp.concatenate([agg1.astype(cdt), x[0:n_dst1, :]], axis=1)          # (n_dst1, 2F)
    h = jnp.dot(z1, w1_ref[...], preferred_element_type=jnp.float32) + b1_ref[...]
    h = jnp.maximum(h, 0.0)            # ReLU in f32 (padded lanes stay exactly 0)
    h_c = h.astype(cdt)                # layer-1 activation stays on-chip

    # ---- layer 2: same structure, no activation
    agg2 = jnp.dot(a2_ref[...], h_c, preferred_element_type=jnp.float32)
    z2 = jnp.concatenate([agg2.astype(cdt), h_c[0:n_dst2, :]], axis=1)        # (n_dst2, 2H)
    out = jnp.dot(z2, w2_ref[...], preferred_element_type=jnp.float32) + b2_ref[...]
    o_ref[...] = out.astype(o_ref.dtype)                                      # lane-dense store


def _pad_lanes(a, width):
    pad = width - a.shape[-1]
    if pad <= 0:
        return a
    return jnp.pad(a, [(0, 0)] * (a.ndim - 1) + [(0, pad)])


def _round_up(n, m):
    return ((n + m - 1) // m) * m


def model_forward(a1, a2, x, params, *, compute_dtype=jnp.bfloat16):
    """Fused two-layer GraphSAGE forward (matches Model.forward).

    a1: (n_dst1, n_src1) mean-adjacency of mfgs[0]
    a2: (n_dst2, n_dst1) mean-adjacency of mfgs[1]
    x : (n_src1, in_feats) input node features
    """
    n_dst2 = a2.shape[0]
    in_feats = x.shape[1]
    h_feats = params["w_self1_t"].shape[1]
    num_classes = params["w_self2_t"].shape[1]

    f_pad = _round_up(in_feats, LANE)
    h_pad = _round_up(h_feats, LANE)
    c_pad = _round_up(num_classes, LANE)

    # Lane-dense bf16 MXU operands (accumulation stays f32 inside the kernel).
    x_p = _pad_lanes(x, f_pad).astype(compute_dtype)
    a1_c = a1.astype(compute_dtype)
    a2_c = a2.astype(compute_dtype)

    # Stack [W_neigh^T ; W_self^T] on the K axis so each layer is a single MXU matmul.
    w1 = jnp.concatenate(
        [
            jnp.pad(params["w_neigh1_t"], ((0, f_pad - in_feats), (0, h_pad - h_feats))),
            jnp.pad(params["w_self1_t"], ((0, f_pad - in_feats), (0, h_pad - h_feats))),
        ],
        axis=0,
    ).astype(compute_dtype)
    b1 = _pad_lanes(params["bias1"].reshape(1, -1), h_pad).astype(jnp.float32)

    w2 = jnp.concatenate(
        [
            jnp.pad(params["w_neigh2_t"], ((0, h_pad - h_feats), (0, c_pad - num_classes))),
            jnp.pad(params["w_self2_t"], ((0, h_pad - h_feats), (0, c_pad - num_classes))),
        ],
        axis=0,
    ).astype(compute_dtype)
    b2 = _pad_lanes(params["bias2"].reshape(1, -1), c_pad).astype(jnp.float32)

    out_p = pl.pallas_call(
        _fused_sage_kernel,
        out_shape=jax.ShapeDtypeStruct((n_dst2, c_pad), jnp.float32),
        # Tiny model: whole arrays live in VMEM for the single fused invocation (no grid).
        in_specs=[pl.BlockSpec(memory_space=pltpu.MemorySpace.VMEM)] * 7,
        out_specs=pl.BlockSpec(memory_space=pltpu.MemorySpace.VMEM),
    )(a1_c, a2_c, x_p, w1, b1, w2, b2)

    return out_p[:, :num_classes]


def _reference_forward_f32(a1, a2, x, params):
    """Pure-JAX f32 reference (exact Model.forward semantics)."""
    n_dst1, n_dst2 = a1.shape[0], a2.shape[0]
    h = jax.nn.relu(
        (a1 @ x) @ params["w_neigh1_t"]
        + x[:n_dst1] @ params["w_self1_t"]
        + params["bias1"][None, :]
    )
    return (
        (a2 @ h) @ params["w_neigh2_t"]
        + h[:n_dst2] @ params["w_self2_t"]
        + params["bias2"][None, :]
    )


def _reference_forward_bf16(a1, a2, x, params):
    """Pure-JAX reference mirroring the kernel's bf16 operands / f32 accumulation."""
    bf, f32 = jnp.bfloat16, jnp.float32
    n_dst1, n_dst2 = a1.shape[0], a2.shape[0]
    a1b, a2b, xb = a1.astype(bf), a2.astype(bf), x.astype(bf)
    wn1, ws1 = params["w_neigh1_t"].astype(bf), params["w_self1_t"].astype(bf)
    wn2, ws2 = params["w_neigh2_t"].astype(bf), params["w_self2_t"].astype(bf)

    agg1 = jnp.dot(a1b, xb, preferred_element_type=f32).astype(bf)
    h = (
        jnp.dot(agg1, wn1, preferred_element_type=f32)
        + jnp.dot(xb[:n_dst1], ws1, preferred_element_type=f32)
        + params["bias1"][None, :]
    )
    h = jnp.maximum(h, 0.0).astype(bf)
    agg2 = jnp.dot(a2b, h, preferred_element_type=f32).astype(bf)
    return (
        jnp.dot(agg2, wn2, preferred_element_type=f32)
        + jnp.dot(h[:n_dst2], ws2, preferred_element_type=f32)
        + params["bias2"][None, :]
    )


def _make_mean_adjacency(key, n_dst, n_src, p=0.35):
    """Random bipartite MFG adjacency, row-normalized for mean aggregation."""
    adj = (jax.random.uniform(key, (n_dst, n_src)) < p).astype(jnp.float32)
    # ensure each dst node has at least one neighbor (DGL MFGs include dst nodes in src)
    adj = adj.at[jnp.arange(n_dst), jnp.arange(n_dst)].set(1.0)
    deg = jnp.maximum(adj.sum(axis=1, keepdims=True), 1.0)
    return adj / deg


if __name__ == "__main__":
    key = jax.random.PRNGKey(0)
    keys = jax.random.split(key, 10)

    # Small, forward-implied shapes
    in_feats, h_feats, num_classes = 16, 32, 8
    n_src1, n_dst1, n_dst2 = 32, 16, 8   # mfgs[0]: 32 src -> 16 dst ; mfgs[1]: 16 src -> 8 dst

    # Input node features
    x = jax.random.normal(keys[0], (n_src1, in_feats), dtype=jnp.float32)

    # MFG mean-aggregation matrices
    a1 = _make_mean_adjacency(keys[1], n_dst1, n_src1)
    a2 = _make_mean_adjacency(keys[2], n_dst2, n_dst1)

    # Deterministic parameters (DGL SAGEConv: fc_self / fc_neigh weights + shared bias),
    # stored pre-transposed as (in_feats, out_feats).
    def lin_w(k, fan_in, fan_out):
        bound = 1.0 / jnp.sqrt(jnp.float32(fan_in))
        return jax.random.uniform(k, (fan_in, fan_out), minval=-bound, maxval=bound,
                                  dtype=jnp.float32)

    params = {
        "w_self1_t":  lin_w(keys[3], in_feats, h_feats),
        "w_neigh1_t": lin_w(keys[4], in_feats, h_feats),
        "bias1":      jnp.zeros((h_feats,), jnp.float32),
        "w_self2_t":  lin_w(keys[5], h_feats, num_classes),
        "w_neigh2_t": lin_w(keys[6], h_feats, num_classes),
        "bias2":      jnp.zeros((num_classes,), jnp.float32),
    }

    fwd = jax.jit(model_forward)
    out = jax.block_until_ready(fwd(a1, a2, x, params))

    assert out.shape == (n_dst2, num_classes)

    # Tight check vs a reference that uses the same bf16-operand / f32-accumulate arithmetic.
    ref_bf = _reference_forward_bf16(a1, a2, x, params)
    assert jnp.allclose(out, ref_bf, atol=2e-3, rtol=2e-3), "mismatch vs bf16-consistent reference"

    # Loose check vs exact f32 Model.forward semantics (bf16 MXU quantization tolerance).
    ref_f32 = _reference_forward_f32(a1, a2, x, params)
    assert jnp.allclose(out, ref_f32, atol=5e-2, rtol=5e-2), "mismatch vs f32 reference"

    print("KERNEL_OK")
</pallas_src>

<mosaic_0001>
module attributes {stable_mosaic.version = 11 : i64} {
  func.func @_fused_sage_kernel(%arg0: memref<16x32xbf16, #tpu.memory_space<vmem>>, %arg1: memref<8x16xbf16, #tpu.memory_space<vmem>>, %arg2: memref<32x128xbf16, #tpu.memory_space<vmem>>, %arg3: memref<256x128xbf16, #tpu.memory_space<vmem>>, %arg4: memref<1x128xf32, #tpu.memory_space<vmem>>, %arg5: memref<256x128xbf16, #tpu.memory_space<vmem>>, %arg6: memref<1x128xf32, #tpu.memory_space<vmem>>, %arg7: memref<8x128xf32, #tpu.memory_space<vmem>>) attributes {dimension_semantics = [], scalar_prefetch = 0 : i64, scratch_operands = 0 : i64, tpu.core_type = #tpu.core_type<tc>} {
    %c0 = arith.constant 0 : index
    %c0_0 = arith.constant 0 : index
    %0 = vector.load %arg2[%c0, %c0_0] : memref<32x128xbf16, #tpu.memory_space<vmem>>, vector<32x128xbf16>
    %c0_1 = arith.constant 0 : index
    %c0_2 = arith.constant 0 : index
    %1 = vector.load %arg0[%c0_1, %c0_2] : memref<16x32xbf16, #tpu.memory_space<vmem>>, vector<16x32xbf16>
    %cst = arith.constant dense<0.000000e+00> : vector<16x128xf32>
    %2 = tpu.matmul %1, %0, %cst {dimension_numbers = #tpu.dot_dimension_numbers<[1], [0], [0], [1], [0, 0, 1, 1], [], []>} : vector<16x32xbf16>, vector<32x128xbf16>, vector<16x128xf32> -> vector<16x128xf32>
    %3 = arith.truncf %2 : vector<16x128xf32> to vector<16x128xbf16>
    %4 = vector.extract_strided_slice %0 {offsets = [0, 0], sizes = [16, 128], strides = [1, 1]} : vector<32x128xbf16> to vector<16x128xbf16>
    %5 = tpu.concatenate %3, %4 in 1 : vector<16x128xbf16>, vector<16x128xbf16> -> vector<16x256xbf16>
    %c0_3 = arith.constant 0 : index
    %c0_4 = arith.constant 0 : index
    %6 = vector.load %arg3[%c0_3, %c0_4] : memref<256x128xbf16, #tpu.memory_space<vmem>>, vector<256x128xbf16>
    %cst_5 = arith.constant dense<0.000000e+00> : vector<16x128xf32>
    %7 = tpu.matmul %5, %6, %cst_5 {dimension_numbers = #tpu.dot_dimension_numbers<[1], [0], [0], [1], [0, 0, 1, 1], [], []>} : vector<16x256xbf16>, vector<256x128xbf16>, vector<16x128xf32> -> vector<16x128xf32>
    %c0_6 = arith.constant 0 : index
    %c0_7 = arith.constant 0 : index
    %8 = vector.load %arg4[%c0_6, %c0_7] : memref<1x128xf32, #tpu.memory_space<vmem>>, vector<1x128xf32>
    %9 = vector.broadcast %8 : vector<1x128xf32> to vector<16x128xf32>
    %10 = arith.addf %7, %9 : vector<16x128xf32>
    %cst_8 = arith.constant 0.000000e+00 : f32
    %11 = vector.broadcast %cst_8 : f32 to vector<16x128xf32>
    %12 = arith.maximumf %10, %11 : vector<16x128xf32>
    %13 = arith.truncf %12 : vector<16x128xf32> to vector<16x128xbf16>
    %c0_9 = arith.constant 0 : index
    %c0_10 = arith.constant 0 : index
    %14 = vector.load %arg1[%c0_9, %c0_10] : memref<8x16xbf16, #tpu.memory_space<vmem>>, vector<8x16xbf16>
    %cst_11 = arith.constant dense<0.000000e+00> : vector<8x128xf32>
    %15 = tpu.matmul %14, %13, %cst_11 {dimension_numbers = #tpu.dot_dimension_numbers<[1], [0], [0], [1], [0, 0, 1, 1], [], []>} : vector<8x16xbf16>, vector<16x128xbf16>, vector<8x128xf32> -> vector<8x128xf32>
    %16 = arith.truncf %15 : vector<8x128xf32> to vector<8x128xbf16>
    %17 = vector.extract_strided_slice %13 {offsets = [0, 0], sizes = [8, 128], strides = [1, 1]} : vector<16x128xbf16> to vector<8x128xbf16>
    %18 = tpu.concatenate %16, %17 in 1 : vector<8x128xbf16>, vector<8x128xbf16> -> vector<8x256xbf16>
    %c0_12 = arith.constant 0 : index
    %c0_13 = arith.constant 0 : index
    %19 = vector.load %arg5[%c0_12, %c0_13] : memref<256x128xbf16, #tpu.memory_space<vmem>>, vector<256x128xbf16>
    %cst_14 = arith.constant dense<0.000000e+00> : vector<8x128xf32>
    %20 = tpu.matmul %18, %19, %cst_14 {dimension_numbers = #tpu.dot_dimension_numbers<[1], [0], [0], [1], [0, 0, 1, 1], [], []>} : vector<8x256xbf16>, vector<256x128xbf16>, vector<8x128xf32> -> vector<8x128xf32>
    %c0_15 = arith.constant 0 : index
    %c0_16 = arith.constant 0 : index
    %21 = vector.load %arg6[%c0_15, %c0_16] : memref<1x128xf32, #tpu.memory_space<vmem>>, vector<1x128xf32>
    %22 = vector.broadcast %21 : vector<1x128xf32> to vector<8x128xf32>
    %23 = arith.addf %20, %22 : vector<8x128xf32>
    %c0_17 = arith.constant 0 : index
    %c0_18 = arith.constant 0 : index
    %24 = vector.load %arg7[%c0_17, %c0_18] : memref<8x128xf32, #tpu.memory_space<vmem>>, vector<8x128xf32>
    tpu.vector_store %arg7[%c0_17, %c0_18], %23 {strides = array<i32>} : memref<8x128xf32, #tpu.memory_space<vmem>>, vector<8x128xf32>,
    return
  }
}

</mosaic_0001>

<bundles_post_ra>
// kernel: model_forward.1
= control target key start
LH: loop header
LB: loop body
LE: loop exit
PB: predicated region body
PF: predicated region fallthrough
CT: control target
= control target key end

     0   :  { %v674_v1 = vmov 0.0   ;;  %vm675_vm0 = vmmov 0   ;;  %vm51_vm1 = vcmask 261120   ;;  %s834_s0 = inlined_call_operand.vmem [shape: bf16[16,32], index: 0, kind: input, shape index: {}]   ;;  %s835_s1 = inlined_call_operand.vmem [shape: bf16[8,16], index: 1, kind: input, shape index: {}]   ;;  %s836_s2 = inlined_call_operand.vmem [shape: bf16[32,128], index: 2, kind: input, shape index: {}]   ;;  %s837_s3 = inlined_call_operand.vmem [shape: bf16[256,128], index: 3, kind: input, shape index: {}]   ;;  %s838_s4 = inlined_call_operand.vmem [shape: f32[1,128], index: 4, kind: input, shape index: {}]   ;;  %s839_s5 = inlined_call_operand.vmem [shape: bf16[256,128], index: 5, kind: input, shape index: {}]   ;;  %s840_s6 = inlined_call_operand.vmem [shape: f32[1,128], index: 6, kind: input, shape index: {}]   ;;  %s841_s7 = inlined_call_operand.hbm [shape: f32[8,128], index: 7, kind: output, shape index: {}]  }
   0x1   :  { %v617_v0 = vld [vmem:[%s836_s2 + $0x8] sm:$0xff]   ;;  %600 = vmatprep.subr.bf16.mxu1 %v674_v1  ;;  %608 = vmatprep.subr.bf16.mxu0 %v674_v1  ;;  %v618_v2 = vld [vmem:[%s836_s2] sm:$0xff]   ;;  %v620_v3 = vld [vmem:[%s837_s3 + $0x78] sm:$0xff]  }
   0x2   :  { %601 = vmatpush3.bf16.msra.mxu1 %v617_v0  ;;  %604 = vmatprep.mubr.msk.bf16.mxu1 %vm675_vm0, %v674_v1  ;;  %v619_v4 = vld [vmem:[%s834_s0] sm:$0xff]   ;;  %v621_v5 = vld [vmem:[%s837_s3 + $0x38] sm:$0xff]   ;;  %v622_v6 = vld [vmem:[%s837_s3 + $0x70] sm:$0xff]  }
   0x3   :  { %602 = vmatprep.subr.bf16.mxu1 %v674_v1  ;;  %610 = vmatprep.mubr.msk.bf16.mxu0 %vm675_vm0, %v674_v1  ;;  %v623_v7 = vld [vmem:[%s837_s3 + $0x30] sm:$0xff]   ;;  %v624_v8 = vld [vmem:[%s837_s3 + $0x68] sm:$0xff]   ;;  %v626_v10 = vld [vmem:[%s837_s3 + $0x60] sm:$0xff]  }
   0x4   :  { %v625_v9 = vld [vmem:[%s837_s3 + $0x28] sm:$0xff]   ;;  %v627_v11 = vld [vmem:[%s837_s3 + $0x20] sm:$0xff]   ;;  %v628_v12 = vld [vmem:[%s837_s3 + $0x58] sm:$0xff]  }
   0x5   :  { %v629_v13 = vld [vmem:[%s837_s3 + $0x18] sm:$0xff]   ;;  %v630_v14 = vld [vmem:[%s837_s3 + $0x50] sm:$0xff]   ;;  %v632_v16 = vld [vmem:[%s837_s3 + $0x48] sm:$0xff]  }
   0x6   :  { %603 = vmatpush3.bf16.msra.mxu1 %v618_v2  ;;  %v631_v15 = vld [vmem:[%s837_s3 + $0x10] sm:$0xff]  }
   0x7   :  { %554 = vmatprep.subr.bf16.mxu1 %v620_v3 }
   0x9   :  { %605 = vmatmul.mubr.msk.bf16.vlgmr.msra.gmra.mxu1 %vm51_vm1, %v619_v4 }
   0xa   :  { %555 = vmatpush3.bf16.msra.mxu1 %v621_v5  ;;  %264 = vmatprep.mubr.bf16.mxu1 %v618_v2 }
   0xb   :  { %556 = vmatprep.subr.bf16.mxu1 %v622_v6 }
   0xe   :  { %557 = vmatpush3.bf16.msra.mxu1 %v623_v7 }
   0xf   :  { %558 = vmatprep.subr.bf16.mxu1 %v624_v8 }
  0x12   :  { %559 = vmatpush3.bf16.msra.mxu1 %v625_v9 }
  0x13   :  { %560 = vmatprep.subr.bf16.mxu1 %v626_v10 }
  0x16   :  { %561 = vmatpush3.bf16.msra.mxu1 %v627_v11 }
  0x17   :  { %562 = vmatprep.subr.bf16.mxu1 %v628_v12 }
  0x1a   :  { %563 = vmatpush3.bf16.msra.mxu1 %v629_v13 }
  0x1b   :  { %564 = vmatprep.subr.bf16.mxu1 %v630_v14 }
  0x1c   :  { %12 = vsyncpa [#allocation3], 0  ;;  %v633_v17 = vld [vmem:[%s837_s3 + $0x8] sm:$0xff]   ;;  %v634_v18 = vld [vmem:[%s837_s3 + $0x40] sm:$0xff]   ;;  %vm277_vm2 = vcmask 130048   ;;  %s676_s20 = smov [#allocation2]  }
  0x1d   :  { %v635_v19 = vld [vmem:[%s837_s3] sm:$0xff]   ;;  %v636_v36 = vld [vmem:[%s839_s5 + $0x78] sm:$0xff]   ;;  %v638_v40 = vld [vmem:[%s839_s5 + $0x70] sm:$0xff]   ;;  %s504_s21 = sshll.u32 %s676_s20, 4  ;;  %s505_s21 = int_to_ptr.vmem [resolvable:$true] %s504_s21 }
  0x1e   :  { %565 = vmatpush3.bf16.msra.mxu1 %v631_v15  ;;  %v516_v28 = vld [vmem:[%s838_s4] ss:$0 sm:$0xff]  ;;  %v637_v39 = vld [vmem:[%s839_s5 + $0x38] sm:$0xff]   ;;  %v639_v41 = vld [vmem:[%s839_s5 + $0x30] sm:$0xff]   ;;  %p657_p1 = scmp.lt.s32.totalorder %s505_s21, %s505_s21 }
  0x1f   :  { %566 = vmatprep.subr.bf16.mxu1 %v632_v16  ;;  %v276_v38 = vld [vmem:[%s835_s1] sm:$0xf]  ;;  %v640_v42 = vld [vmem:[%s839_s5 + $0x68] sm:$0xff]   ;;  %v644_v46 = vld [vmem:[%s839_s5 + $0x58] sm:$0xff]  }
  0x20   :  { %v641_v43 = vld [vmem:[%s839_s5 + $0x28] sm:$0xff]   ;;  %v642_v44 = vld [vmem:[%s839_s5 + $0x60] sm:$0xff]   ;;  %v645_v47 = vld [vmem:[%s839_s5 + $0x18] sm:$0xff]  }
  0x21   :  { %v643_v45 = vld [vmem:[%s839_s5 + $0x20] sm:$0xff]   ;;  %v646_v48 = vld [vmem:[%s839_s5 + $0x50] sm:$0xff]   ;;  %v648_v50 = vld [vmem:[%s839_s5 + $0x48] sm:$0xff]  }
  0x22   :  { %567 = vmatpush3.bf16.msra.mxu1 %v633_v17  ;;  %v647_v49 = vld [vmem:[%s839_s5 + $0x10] sm:$0xff]   ;;  %v649_v51 = vld [vmem:[%s839_s5 + $0x8] sm:$0xff]   ;;  %v650_v52 = vld [vmem:[%s839_s5 + $0x40] sm:$0xff]  }
  0x23   :  { %568 = vmatprep.subr.bf16.mxu1 %v634_v18  ;;  %v651_v53 = vld [vmem:[%s839_s5] sm:$0xff]   ;;  %s652_s5 = scalar_lea.vmem %s505_s21, 128 }
  0x24   :  { %v534_v61 = vld [vmem:[%s840_s6] ss:$0 sm:$0xff]  ;;  %p653_p0 = scmp.ne.s32.totalorder %s505_s21, %s652_s5  ;;  %p658_p2 = scmp.lt.s32.totalorder %s652_s5, %s652_s5 }
  0x26   :  { %569 = vmatpush3.bf16.msra.mxu1 %v635_v19  ;;  %p659_p3 = por %p658_p2, %p657_p1 }
  0x28   :  { %p660_p4 = pnand %p659_p3, %p653_p0 }
  0xc9   :  { %v89_v20 = vpop.f32.mrf.mxu1 }
  0xcb   :  { %v606_v21 = vpop.f32.mrf.mxu1 }
  0xcd   :  { %v92_v22 = vpop.f32.mrf.mxu1 }
  0xce   :  { %v96_v23 = vpack.c.bf16 %v92_v22, %v89_v20 }
  0xcf   :  { %v607_v24 = vpop.f32.mrf.mxu1 }
  0xd0   :  { %265 = vmatmul.mubr.bf16.vlgmr.msra.gmra.mxu1 %v96_v23 }
 0x190   :  { %v570_v25 = vpop.f32.mrf.mxu1 }
 0x192   :  { %v571_v26 = vpop.f32.mrf.mxu1 }
 0x193   :  { %v572_v27 = vadd.f32 %v571_v26, %v570_v25 }
 0x194   :  { %v573_v29 = vpop.f32.mrf.mxu1 }
 0x195   :  { %v267_v31 = vadd.f32 %v572_v27, %v516_v28 }
 0x196   :  { %v574_v30 = vpop.f32.mrf.mxu1 }
 0x197   :  { %v575_v32 = vadd.f32 %v574_v30, %v573_v29  ;;  %v273_v34 = vmax.f32 %v267_v31, 0.0 }
 0x199   :  { %v270_v33 = vadd.f32 %v575_v32, %v516_v28 }
 0x19b   :  { %v274_v35 = vmax.f32 %v270_v33, 0.0 }
 0x19d   :  { %v275_v37 = vpack.c.bf16 %v274_v35, %v273_v34 }
 0x19f   :  { %609 = vmatpush3.bf16.msra.mxu0 %v275_v37 }
 0x1a0   :  { %578 = vmatprep.subr.bf16.mxu0 %v636_v36 }
 0x1a2   :  { %611 = vmatmul.mubr.msk.bf16.vlgmr.msra.gmra.mxu0 %vm277_vm2, %v276_v38 }
 0x1a3   :  { %489 = vmatprep.mubr.bf16.mxu0 %v275_v37  ;;  %579 = vmatpush3.bf16.msra.mxu0 %v637_v39 }
 0x1a4   :  { %580 = vmatprep.subr.bf16.mxu0 %v638_v40 }
 0x1a7   :  { %581 = vmatpush3.bf16.msra.mxu0 %v639_v41 }
 0x1a8   :  { %582 = vmatprep.subr.bf16.mxu0 %v640_v42 }
 0x1ab   :  { %583 = vmatpush3.bf16.msra.mxu0 %v641_v43 }
 0x1ac   :  { %584 = vmatprep.subr.bf16.mxu0 %v642_v44 }
 0x1af   :  { %585 = vmatpush3.bf16.msra.mxu0 %v643_v45 }
 0x1b0   :  { %586 = vmatprep.subr.bf16.mxu0 %v644_v46 }
 0x1b3   :  { %587 = vmatpush3.bf16.msra.mxu0 %v645_v47 }
 0x1b4   :  { %588 = vmatprep.subr.bf16.mxu0 %v646_v48 }
 0x1b7   :  { %589 = vmatpush3.bf16.msra.mxu0 %v647_v49 }
 0x1b8   :  { %590 = vmatprep.subr.bf16.mxu0 %v648_v50 }
 0x1bb   :  { %591 = vmatpush3.bf16.msra.mxu0 %v649_v51 }
 0x1bc   :  { %592 = vmatprep.subr.bf16.mxu0 %v650_v52 }
 0x1bf   :  { %593 = vmatpush3.bf16.msra.mxu0 %v651_v53 }
 0x262   :  { %v315_v54 = vpop.f32.mrf.mxu0 }
 0x263   :  { %v321_v55 = vpack.c.bf16 %v315_v54, %v315_v54 }
 0x264   :  { %v612_v56 = vpop.f32.mrf.mxu0 }
 0x265   :  { %490 = vmatmul.mubr.bf16.vlgmr.msra.gmra.mxu0 %v321_v55 }
 0x266   :  { %v318_v57 = vpop.f32.mrf.mxu0 }
 0x268   :  { %v613_v58 = vpop.f32.mrf.mxu0 }
 0x325   :  { %v594_v59 = vpop.f32.mrf.mxu0 }
 0x327   :  { %v595_v60 = vpop.f32.mrf.mxu0 }
 0x328   :  { %v596_v62 = vadd.f32 %v595_v60, %v594_v59 }
 0x329   :  { %v597_v63 = vpop.f32.mrf.mxu0 }
 0x32a   :  { %v492_v0 = vadd.f32 %v596_v62, %v534_v61 }
 0x32b   :  { %v598_v1 = vpop.f32.mrf.mxu0 }
 0x32c   :  { %497 = vst [vmem:[#allocation2] sm:$0xff] %v492_v0 }
 0x32d   :  { %663 = shalt.err (!%p660_p4)
}
 0x32e   :  { %507 = dma.vmem_to_hbm [thread:$0]  %s505_s21, 128, %s841_s7, [#allocation3]  }
 0x32f   :  { %672 = dma.done.wait [#allocation3], 128  }
 0x330   :  { %673 = vsyncadd [#allocation3], 4294967168 }
 0x331   :  { %511 = vsyncpa [#allocation3], 1 }

</bundles_post_ra>
